<compile_context>
chip_gen: v6e
topology: v6e:2x2x1
jax: 0.10.0
libtpu: 0.0.40
codegen_flags: <defaults>
</compile_context>

<pallas_src>
import jax
import jax.numpy as jnp
from jax.experimental import pallas as pl
from jax.experimental.pallas import tpu as pltpu

HIDDEN = 64    # logical hidden width (nn.Linear(input_dim, 64))
LANE = 128     # TPU lane width — pad hidden/output to this for dense stores


def _round_up(n, m):
    return ((n + m - 1) // m) * m


def _mlp_kernel(x_ref, w1_ref, b1_ref, w2_ref, b2_ref, w3_ref, b3_ref, o_ref):
    """One batch tile of fc1->ReLU->fc2->ReLU->fc3->sigmoid (inference)."""
    # x streams in as f32; cast to bf16 on the VPU (free filler, kernel is
    # memory-bound) so the MXU runs bf16 operands with f32 accumulation.
    x = x_ref[...].astype(jnp.bfloat16)

    # fc1 + ReLU
    h1 = jnp.dot(x, w1_ref[...], preferred_element_type=jnp.float32)
    h1 = jnp.maximum(h1 + b1_ref[...], 0.0)
    # TODO(synk): training-mode dropout would use pltpu.prng_seed /
    # prng_random_bits with a per-tile seed here (identity in eval mode).

    # fc2 + ReLU
    h2 = jnp.dot(h1.astype(jnp.bfloat16), w2_ref[...],
                 preferred_element_type=jnp.float32)
    h2 = jnp.maximum(h2 + b2_ref[...], 0.0)

    # fc3 + exact sigmoid (exp -> EUP; exact divide — huge slack in a
    # memory-bound kernel, so no approx error in the output probabilities).
    logits = jnp.dot(h2.astype(jnp.bfloat16), w3_ref[...],
                     preferred_element_type=jnp.float32)
    logits = logits + b3_ref[...]
    o_ref[...] = (1.0 / (1.0 + jnp.exp(-logits))).astype(o_ref.dtype)


def prepare_params(params):
    """One-time parameter prep: zero-pad to lane-dense shapes + bf16 cast.

    Hoisted out of the per-call path (the per-call pad/convert ops were pure
    fixed overhead). Padding is semantics-preserving: padded hidden units are
    ReLU(0)=0 and feed zero weight rows; padded output columns are sliced off
    in the wrapper.
    """
    w1, b1, w2, b2, w3, b3 = (
        params["w1"], params["b1"], params["w2"],
        params["b2"], params["w3"], params["b3"],
    )
    in_dim = w1.shape[0]
    out_dim = w3.shape[1]
    hp = _round_up(HIDDEN, LANE)   # 64  -> 128 (lane-dense hidden)
    op = _round_up(out_dim, LANE)  # e.g. 8 -> 128 (lane-dense output stores)

    prepped = {
        "w1": jnp.zeros((in_dim, hp), jnp.bfloat16).at[:, :HIDDEN].set(
            w1.astype(jnp.bfloat16)),
        "b1": jnp.zeros((1, hp), jnp.float32).at[:, :HIDDEN].set(b1),
        "w2": jnp.zeros((hp, hp), jnp.bfloat16).at[:HIDDEN, :HIDDEN].set(
            w2.astype(jnp.bfloat16)),
        "b2": jnp.zeros((1, hp), jnp.float32).at[:, :HIDDEN].set(b2),
        "w3": jnp.zeros((hp, op), jnp.bfloat16).at[:HIDDEN, :out_dim].set(
            w3.astype(jnp.bfloat16)),
        "b3": jnp.zeros((1, op), jnp.float32).at[:, :out_dim].set(b3),
        "in_dim": in_dim,
        "out_dim": out_dim,
        "hp": hp,
        "op": op,
    }
    return prepped


def bayesian_nn_forward(x, prepped, *, batch_tile=4096):
    """x: (B, input_dim) float32. prepped: output of prepare_params()."""
    B, in_dim = x.shape
    assert in_dim == prepped["in_dim"]
    out_dim, hp, op = prepped["out_dim"], prepped["hp"], prepped["op"]

    # Batch tile: large (default 4096) so per-step HBM traffic dwarfs the
    # ~0.35 us fixed pipeline overhead; multiple of 16 (bf16 sublane packing
    # on the output tile); shrinks for tiny batches. Pad B to the grid.
    tb = min(_round_up(batch_tile, 16), _round_up(B, 16))
    bp = _round_up(B, tb)
    xp = x if bp == B else jnp.pad(x, ((0, bp - B), (0, 0)))

    grid = (bp // tb,)

    flops = 2 * bp * (in_dim * hp + hp * hp + hp * op)
    w_bytes = (prepped["w1"].size + prepped["w2"].size + prepped["w3"].size) * 2
    b_bytes = (prepped["b1"].size + prepped["b2"].size + prepped["b3"].size) * 4
    bytes_accessed = (
        bp * in_dim * 4          # f32 x stream
        + w_bytes + b_bytes      # VMEM-resident params (fetched once)
        + bp * op * 2            # bf16 output stream
    )

    # NOTE: weight/bias BlockSpecs use constant index_maps so their tiles stay
    # VMEM-resident across the whole grid (no per-step re-DMA).
    # TODO(synk): on v7x, verify the batch axis shards across both TensorCores;
    # if the trace shows one TC, switch to pltpu.CORE_PARALLEL for this axis.
    out = pl.pallas_call(
        _mlp_kernel,
        out_shape=jax.ShapeDtypeStruct((bp, op), jnp.bfloat16),
        grid=grid,
        in_specs=[
            pl.BlockSpec((tb, in_dim), lambda i: (i, 0)),   # x: tiled over batch
            pl.BlockSpec((in_dim, hp), lambda i: (0, 0)),   # weights/biases:
            pl.BlockSpec((1, hp),      lambda i: (0, 0)),   # VMEM-resident
            pl.BlockSpec((hp, hp),     lambda i: (0, 0)),
            pl.BlockSpec((1, hp),      lambda i: (0, 0)),
            pl.BlockSpec((hp, op),     lambda i: (0, 0)),
            pl.BlockSpec((1, op),      lambda i: (0, 0)),
        ],
        out_specs=pl.BlockSpec((tb, op), lambda i: (i, 0)),
        compiler_params=pltpu.CompilerParams(
            dimension_semantics=("parallel",),      # megacore sharding
            vmem_limit_bytes=48 * 1024 * 1024,      # safe within v7x's 64 MiB
        ),
        cost_estimate=pl.CostEstimate(
            flops=flops, transcendentals=bp * op, bytes_accessed=bytes_accessed),
    )(xp, prepped["w1"], prepped["b1"], prepped["w2"], prepped["b2"],
      prepped["w3"], prepped["b3"])

    # Slice off padding and upcast the small unpadded view back to f32.
    return out[:B, :out_dim].astype(jnp.float32)


def init_params(key, input_dim, output_dim, hidden=HIDDEN):
    """Deterministic synthetic parameters (same shapes as the PyTorch module)."""
    k1, k2, k3, k4, k5, k6 = jax.random.split(key, 6)
    s1 = 1.0 / jnp.sqrt(input_dim)
    s2 = 1.0 / jnp.sqrt(hidden)
    return {
        "w1": jax.random.uniform(k1, (input_dim, hidden), jnp.float32, -s1, s1),
        "b1": jax.random.uniform(k2, (1, hidden), jnp.float32, -s1, s1),
        "w2": jax.random.uniform(k3, (hidden, hidden), jnp.float32, -s2, s2),
        "b2": jax.random.uniform(k4, (1, hidden), jnp.float32, -s2, s2),
        "w3": jax.random.uniform(k5, (hidden, output_dim), jnp.float32, -s2, s2),
        "b3": jax.random.uniform(k6, (1, output_dim), jnp.float32, -s2, s2),
    }


def _reference_forward(x, params):
    h1 = jnp.maximum(x @ params["w1"] + params["b1"], 0.0)
    h2 = jnp.maximum(h1 @ params["w2"] + params["b2"], 0.0)
    return jax.nn.sigmoid(h2 @ params["w3"] + params["b3"])


if __name__ == "__main__":
    key = jax.random.PRNGKey(0)
    k_x, k_p = jax.random.split(key)

    batch, input_dim, output_dim = 8, 32, 8
    x = jax.random.normal(k_x, (batch, input_dim), jnp.float32)
    params = init_params(k_p, input_dim, output_dim)

    prepped = prepare_params(params)          # one-time param prep (hoisted)
    out = bayesian_nn_forward(x, prepped)
    out = jax.block_until_ready(out)

    ref = _reference_forward(x, params)
    assert out.shape == (batch, output_dim)
    # bf16 matmul operands / bf16 output store -> loose tolerance.
    assert jnp.allclose(out, ref, atol=2e-2, rtol=2e-2), (
        f"max abs err {jnp.max(jnp.abs(out - ref))}")

    print("KERNEL_OK")
</pallas_src>

<mosaic_0001>
module attributes {stable_mosaic.version = 11 : i64} {
  func.func @_mlp_kernel(%arg0: i32, %arg1: memref<16x32xf32, #tpu.memory_space<vmem>>, %arg2: memref<32x128xbf16, #tpu.memory_space<vmem>>, %arg3: memref<1x128xf32, #tpu.memory_space<vmem>>, %arg4: memref<128x128xbf16, #tpu.memory_space<vmem>>, %arg5: memref<1x128xf32, #tpu.memory_space<vmem>>, %arg6: memref<128x128xbf16, #tpu.memory_space<vmem>>, %arg7: memref<1x128xf32, #tpu.memory_space<vmem>>, %arg8: memref<16x128xbf16, #tpu.memory_space<vmem>>) attributes {dimension_semantics = [#tpu.dimension_semantics<parallel>], iteration_bounds = array<i64: 1>, scalar_prefetch = 0 : i64, scratch_operands = 0 : i64, tpu.core_type = #tpu.core_type<tc>, window_params = [{transform_indices = @transform_0, window_bounds = array<i64: 16, 32>}, {pipeline_mode = #tpu.pipeline_mode<synchronous>, transform_indices = @transform_1, window_bounds = array<i64: 32, 128>}, {pipeline_mode = #tpu.pipeline_mode<synchronous>, transform_indices = @transform_2, window_bounds = array<i64: 1, 128>}, {pipeline_mode = #tpu.pipeline_mode<synchronous>, transform_indices = @transform_3, window_bounds = array<i64: 128, 128>}, {pipeline_mode = #tpu.pipeline_mode<synchronous>, transform_indices = @transform_4, window_bounds = array<i64: 1, 128>}, {pipeline_mode = #tpu.pipeline_mode<synchronous>, transform_indices = @transform_5, window_bounds = array<i64: 128, 128>}, {pipeline_mode = #tpu.pipeline_mode<synchronous>, transform_indices = @transform_6, window_bounds = array<i64: 1, 128>}, {transform_indices = @transform_7, window_bounds = array<i64: 16, 128>}]} {
    %c0 = arith.constant 0 : index
    %c0_0 = arith.constant 0 : index
    %0 = vector.load %arg1[%c0, %c0_0] : memref<16x32xf32, #tpu.memory_space<vmem>>, vector<16x32xf32>
    %1 = arith.truncf %0 : vector<16x32xf32> to vector<16x32xbf16>
    %c0_1 = arith.constant 0 : index
    %c0_2 = arith.constant 0 : index
    %2 = vector.load %arg2[%c0_1, %c0_2] : memref<32x128xbf16, #tpu.memory_space<vmem>>, vector<32x128xbf16>
    %cst = arith.constant dense<0.000000e+00> : vector<16x128xf32>
    %3 = tpu.matmul %1, %2, %cst {dimension_numbers = #tpu.dot_dimension_numbers<[1], [0], [0], [1], [0, 0, 1, 1], [], []>} : vector<16x32xbf16>, vector<32x128xbf16>, vector<16x128xf32> -> vector<16x128xf32>
    %c0_3 = arith.constant 0 : index
    %c0_4 = arith.constant 0 : index
    %4 = vector.load %arg3[%c0_3, %c0_4] : memref<1x128xf32, #tpu.memory_space<vmem>>, vector<1x128xf32>
    %5 = vector.broadcast %4 : vector<1x128xf32> to vector<16x128xf32>
    %6 = arith.addf %3, %5 : vector<16x128xf32>
    %cst_5 = arith.constant 0.000000e+00 : f32
    %7 = vector.broadcast %cst_5 : f32 to vector<16x128xf32>
    %8 = arith.maximumf %6, %7 : vector<16x128xf32>
    %9 = arith.truncf %8 : vector<16x128xf32> to vector<16x128xbf16>
    %c0_6 = arith.constant 0 : index
    %c0_7 = arith.constant 0 : index
    %10 = vector.load %arg4[%c0_6, %c0_7] : memref<128x128xbf16, #tpu.memory_space<vmem>>, vector<128x128xbf16>
    %cst_8 = arith.constant dense<0.000000e+00> : vector<16x128xf32>
    %11 = tpu.matmul %9, %10, %cst_8 {dimension_numbers = #tpu.dot_dimension_numbers<[1], [0], [0], [1], [0, 0, 1, 1], [], []>} : vector<16x128xbf16>, vector<128x128xbf16>, vector<16x128xf32> -> vector<16x128xf32>
    %c0_9 = arith.constant 0 : index
    %c0_10 = arith.constant 0 : index
    %12 = vector.load %arg5[%c0_9, %c0_10] : memref<1x128xf32, #tpu.memory_space<vmem>>, vector<1x128xf32>
    %13 = vector.broadcast %12 : vector<1x128xf32> to vector<16x128xf32>
    %14 = arith.addf %11, %13 : vector<16x128xf32>
    %cst_11 = arith.constant 0.000000e+00 : f32
    %15 = vector.broadcast %cst_11 : f32 to vector<16x128xf32>
    %16 = arith.maximumf %14, %15 : vector<16x128xf32>
    %17 = arith.truncf %16 : vector<16x128xf32> to vector<16x128xbf16>
    %c0_12 = arith.constant 0 : index
    %c0_13 = arith.constant 0 : index
    %18 = vector.load %arg6[%c0_12, %c0_13] : memref<128x128xbf16, #tpu.memory_space<vmem>>, vector<128x128xbf16>
    %cst_14 = arith.constant dense<0.000000e+00> : vector<16x128xf32>
    %19 = tpu.matmul %17, %18, %cst_14 {dimension_numbers = #tpu.dot_dimension_numbers<[1], [0], [0], [1], [0, 0, 1, 1], [], []>} : vector<16x128xbf16>, vector<128x128xbf16>, vector<16x128xf32> -> vector<16x128xf32>
    %c0_15 = arith.constant 0 : index
    %c0_16 = arith.constant 0 : index
    %20 = vector.load %arg7[%c0_15, %c0_16] : memref<1x128xf32, #tpu.memory_space<vmem>>, vector<1x128xf32>
    %21 = vector.broadcast %20 : vector<1x128xf32> to vector<16x128xf32>
    %22 = arith.addf %19, %21 : vector<16x128xf32>
    %cst_17 = arith.constant 0.000000e+00 : f32
    %23 = vector.broadcast %cst_17 : f32 to vector<16x128xf32>
    %24 = arith.subf %23, %22 : vector<16x128xf32>
    %25 = math.exp %24 : vector<16x128xf32>
    %cst_18 = arith.constant 1.000000e+00 : f32
    %26 = vector.broadcast %cst_18 : f32 to vector<16x128xf32>
    %27 = arith.addf %26, %25 : vector<16x128xf32>
    %cst_19 = arith.constant 1.000000e+00 : f32
    %28 = vector.broadcast %cst_19 : f32 to vector<16x128xf32>
    %29 = arith.divf %28, %27 : vector<16x128xf32>
    %30 = arith.truncf %29 : vector<16x128xf32> to vector<16x128xbf16>
    %c0_20 = arith.constant 0 : index
    %c0_21 = arith.constant 0 : index
    %31 = vector.load %arg8[%c0_20, %c0_21] : memref<16x128xbf16, #tpu.memory_space<vmem>>, vector<16x128xbf16>
    tpu.vector_store %arg8[%c0_20, %c0_21], %30 {strides = array<i32>} : memref<16x128xbf16, #tpu.memory_space<vmem>>, vector<16x128xbf16>,
    return
  }
  func.func @transform_0(%arg0: i32) -> (i32, i32) {
    %c0_i32 = arith.constant 0 : i32
    %c0_i32_0 = arith.constant 0 : i32
    return %arg0, %c0_i32 : i32, i32
  }
  func.func @transform_1(%arg0: i32) -> (i32, i32) {
    %c0_i32 = arith.constant 0 : i32
    %c0_i32_0 = arith.constant 0 : i32
    %c0_i32_1 = arith.constant 0 : i32
    return %c0_i32, %c0_i32_0 : i32, i32
  }
  func.func @transform_2(%arg0: i32) -> (i32, i32) {
    %c0_i32 = arith.constant 0 : i32
    %c0_i32_0 = arith.constant 0 : i32
    %c0_i32_1 = arith.constant 0 : i32
    return %c0_i32, %c0_i32_0 : i32, i32
  }
  func.func @transform_3(%arg0: i32) -> (i32, i32) {
    %c0_i32 = arith.constant 0 : i32
    %c0_i32_0 = arith.constant 0 : i32
    %c0_i32_1 = arith.constant 0 : i32
    return %c0_i32, %c0_i32_0 : i32, i32
  }
  func.func @transform_4(%arg0: i32) -> (i32, i32) {
    %c0_i32 = arith.constant 0 : i32
    %c0_i32_0 = arith.constant 0 : i32
    %c0_i32_1 = arith.constant 0 : i32
    return %c0_i32, %c0_i32_0 : i32, i32
  }
  func.func @transform_5(%arg0: i32) -> (i32, i32) {
    %c0_i32 = arith.constant 0 : i32
    %c0_i32_0 = arith.constant 0 : i32
    %c0_i32_1 = arith.constant 0 : i32
    return %c0_i32, %c0_i32_0 : i32, i32
  }
  func.func @transform_6(%arg0: i32) -> (i32, i32) {
    %c0_i32 = arith.constant 0 : i32
    %c0_i32_0 = arith.constant 0 : i32
    %c0_i32_1 = arith.constant 0 : i32
    return %c0_i32, %c0_i32_0 : i32, i32
  }
  func.func @transform_7(%arg0: i32) -> (i32, i32) {
    %c0_i32 = arith.constant 0 : i32
    %c0_i32_0 = arith.constant 0 : i32
    return %arg0, %c0_i32 : i32, i32
  }
}

</mosaic_0001>

<bundles_post_ra>
// kernel: tpu_custom_call.1
= control target key start
LH: loop header
LB: loop body
LE: loop exit
PB: predicated region body
PF: predicated region fallthrough
CT: control target
= control target key end

     0   :  { %12 = vsyncpa [#allocation3], 0  ;;  %s781_s0 = inlined_call_operand.hbm [shape: f32[16,32], index: 0, kind: input, shape index: {}]   ;;  %s782_s1 = inlined_call_operand.hbm [shape: bf16[32,128], index: 1, kind: input, shape index: {}]   ;;  %s783_s2 = inlined_call_operand.vmem [shape: f32[1,128], index: 2, kind: input, shape index: {}]   ;;  %s784_s3 = inlined_call_operand.hbm [shape: bf16[128,128], index: 3, kind: input, shape index: {}]   ;;  %s785_s4 = inlined_call_operand.vmem [shape: f32[1,128], index: 4, kind: input, shape index: {}]   ;;  %s786_s5 = inlined_call_operand.hbm [shape: bf16[128,128], index: 5, kind: input, shape index: {}]   ;;  %s787_s6 = inlined_call_operand.vmem [shape: f32[1,128], index: 6, kind: input, shape index: {}]   ;;  %s788_s7 = inlined_call_operand.hbm [shape: bf16[16,128], index: 7, kind: output, shape index: {}]  }
   0x1   :  { %13 = vsyncpa [#allocation6], 0 }
   0x2   :  { %14 = vsyncpa [#allocation9], 0 }
   0x3   :  { %15 = vsyncpa [#allocation4], 0  ;;  %s670_s24 = smov [#allocation5]  }
   0x4   :  { %s33_s25 = sshll.u32 %s670_s24, 4  ;;  %s34_s25 = int_to_ptr.vmem [resolvable:$true] %s33_s25 }
   0x5   :  { %s570_s26 = scalar_lea.vmem %s34_s25, 256  ;;  %p575_p1 = scmp.lt.s32.totalorder %s34_s25, %s34_s25 }
   0x6   :  { %p571_p0 = scmp.ne.s32.totalorder %s34_s25, %s570_s26  ;;  %p576_p2 = scmp.lt.s32.totalorder %s570_s26, %s570_s26 }
   0x8   :  { %p577_p3 = por %p576_p2, %p575_p1 }
   0xa   :  { %p578_p4 = pnand %p577_p3, %p571_p0 }
   0xc   :  { %581 = shalt.err (!%p578_p4)
}
   0xd   :  { %s671_s27 = smov 64   ;;  %s672_s28 = smov 4  }
   0xe   :  { %39 = dma.hbm_to_vmem [thread:$0]  %s782_s1, 256, %s34_s25, [#allocation6], %s671_s27, %s671_s27, %s672_s28  }
   0xf   :  { %s673_s8 = smov [#allocation2]  }
  0x10   :  { %s21_s9 = sshll.u32 %s673_s8, 4  ;;  %s22_s9 = int_to_ptr.vmem [resolvable:$true] %s21_s9 }
  0x11   :  { %s590_s10 = scalar_lea.vmem %s22_s9, 256  ;;  %p595_p6 = scmp.lt.s32.totalorder %s22_s9, %s22_s9 }
  0x12   :  { %p591_p5 = scmp.ne.s32.totalorder %s22_s9, %s590_s10  ;;  %p596_p7 = scmp.lt.s32.totalorder %s590_s10, %s590_s10 }
  0x14   :  { %p597_p8 = por %p596_p7, %p595_p6 }
  0x16   :  { %p598_p9 = pnand %p597_p8, %p591_p5 }
  0x18   :  { %601 = shalt.err (!%p598_p9)
}
  0x19   :  { %s674_s11 = smov 128   ;;  %s675_s12 = smov 8  }
  0x1a   :  { %27 = dma.hbm_to_vmem [thread:$0]  %s781_s0, 256, %s22_s9, [#allocation3], %s674_s11, %s674_s11, %s675_s12  }
  0x1b   :  { %s676_s15 = smov [#allocation7]   ;;  %s677_s17 = smov [#allocation8]  }
  0x1c   :  { %s47_s16 = sshll.u32 %s676_s15, 4  ;;  %s61_s1 = sshll.u32 %s677_s17, 4  ;;  %s48_s16 = int_to_ptr.vmem [resolvable:$true] %s47_s16  ;;  %s62_s1 = int_to_ptr.vmem [resolvable:$true] %s61_s1 }
  0x1d   :  { %s610_s18 = scalar_lea.vmem %s48_s16, 1024  ;;  %p615_p11 = scmp.lt.s32.totalorder %s48_s16, %s48_s16 }
  0x1e   :  { %p611_p10 = scmp.ne.s32.totalorder %s48_s16, %s610_s18  ;;  %p616_p12 = scmp.lt.s32.totalorder %s610_s18, %s610_s18 }
  0x20   :  { %p617_p13 = por %p616_p12, %p615_p11 }
  0x22   :  { %p618_p0 = pnand %p617_p13, %p611_p10 }
  0x24   :  { %621 = shalt.err (!%p618_p0)
}
  0x25   :  { %53 = dma.hbm_to_vmem [thread:$0]  %s784_s3, 1024, %s48_s16, [#allocation6], %s671_s27, %s671_s27, %s672_s28  }
  0x26   :  { %s630_s0 = scalar_lea.vmem %s62_s1, 1024  ;;  %p635_p2 = scmp.lt.s32.totalorder %s62_s1, %s62_s1 }
  0x27   :  { %p631_p1 = scmp.ne.s32.totalorder %s62_s1, %s630_s0  ;;  %p636_p3 = scmp.lt.s32.totalorder %s630_s0, %s630_s0 }
  0x29   :  { %p637_p4 = por %p636_p3, %p635_p2 }
  0x2b   :  { %p638_p5 = pnand %p637_p4, %p631_p1 }
  0x2d   :  { %641 = shalt.err (!%p638_p5)
}
  0x2e   :  { %67 = dma.hbm_to_vmem [thread:$0]  %s786_s5, 1024, %s62_s1, [#allocation9], %s671_s27, %s671_s27, %s672_s28  }
  0x2f   :  { %662 = dma.done.wait [#allocation3], 256  }
  0x30   :  { %663 = vsyncadd [#allocation3], 4294967040 }
  0x31   :  { %664 = dma.done.wait [#allocation6], 1280  }
  0x32   :  { %665 = vsyncadd [#allocation6], 4294966016 }
  0x33   :  { %666 = dma.done.wait [#allocation9], 1024  }
  0x34   :  { %667 = vsyncadd [#allocation9], 4294966272  ;;  %v678_v0 = vmov 0.0   ;;  %vm679_vm0 = vmmov 0   ;;  %v536_v1 = vld [vmem:[#allocation5 + $0x8] sm:$0xff]   ;;  %v537_v2 = vld [vmem:[#allocation5] sm:$0xff]  }
  0x35   :  { %477 = vmatprep.subr.bf16.mxu0 %v678_v0  ;;  %481 = vmatprep.mubr.msk.bf16.mxu0 %vm679_vm0, %v678_v0  ;;  %v83_v3 = vld [vmem:[#allocation2] sm:$0xff]  ;;  %v84_v4 = vld [vmem:[#allocation2 + $0x8] sm:$0xff]  ;;  %v538_v5 = vld [vmem:[#allocation7 + $0x38] sm:$0xff]   ;;  %vm109_vm1 = vcmask 261120  }
  0x36   :  { %485 = vmatprep.subr.bf16.mxu1 %v678_v0  ;;  %501 = vmatprep.mubr.msk.bf16.mxu1 %vm679_vm0, %v678_v0  ;;  %v85_v6 = vpack.c.bf16 %v84_v4, %v83_v3  ;;  %v539_v7 = vld [vmem:[#allocation7 + $0x30] sm:$0xff]   ;;  %v540_v8 = vld [vmem:[#allocation7 + $0x28] sm:$0xff]   ;;  %v541_v9 = vld [vmem:[#allocation7 + $0x20] sm:$0xff]  }
  0x37   :  { %478 = vmatpush3.bf16.msra.mxu0 %v536_v1  ;;  %486 = vmatpush3.bf16.msra.mxu1 %v538_v5  ;;  %v542_v10 = vld [vmem:[#allocation7 + $0x18] sm:$0xff]   ;;  %v543_v11 = vld [vmem:[#allocation7 + $0x10] sm:$0xff]   ;;  %v544_v12 = vld [vmem:[#allocation7 + $0x8] sm:$0xff]  }
  0x38   :  { %479 = vmatprep.subr.bf16.mxu0 %v678_v0  ;;  %487 = vmatprep.subr.bf16.mxu1 %v678_v0  ;;  %v545_v13 = vld [vmem:[#allocation7] sm:$0xff]   ;;  %v546_v14 = vld [vmem:[#allocation8 + $0x38] sm:$0xff]   ;;  %v547_v15 = vld [vmem:[#allocation8 + $0x30] sm:$0xff]  }
  0x39   :  { %v548_v16 = vld [vmem:[#allocation8 + $0x28] sm:$0xff]   ;;  %v549_v17 = vld [vmem:[#allocation8 + $0x20] sm:$0xff]   ;;  %v550_v18 = vld [vmem:[#allocation8 + $0x18] sm:$0xff]  }
  0x3a   :  { %v425_v19 = vld [vmem:[%s783_s2] ss:$0 sm:$0xff]  ;;  %v551_v29 = vld [vmem:[#allocation8 + $0x10] sm:$0xff]   ;;  %v552_v30 = vld [vmem:[#allocation8 + $0x8] sm:$0xff]  }
  0x3b   :  { %480 = vmatpush3.bf16.msra.mxu0 %v537_v2  ;;  %488 = vmatpush3.bf16.msra.mxu1 %v539_v7  ;;  %v553_v31 = vld [vmem:[#allocation8] sm:$0xff]  }
  0x3c   :  { %505 = vmatprep.subr.bf16.mxu0 %v678_v0  ;;  %489 = vmatprep.subr.bf16.mxu1 %v678_v0  ;;  %v429_v32 = vld [vmem:[%s785_s4] ss:$0 sm:$0xff]  ;;  %s680_s4 = smov [#allocation10]  }
  0x3d   :  { %v438_v42 = vld [vmem:[%s787_s6] ss:$0 sm:$0xff]  ;;  %s411_s6 = sshll.u32 %s680_s4, 4  ;;  %s412_s6 = int_to_ptr.vmem [resolvable:$true] %s411_s6 }
  0x3e   :  { %482 = vmatmul.mubr.msk.bf16.vlgmr.msra.gmra.mxu0 %vm109_vm1, %v85_v6  ;;  %s642_s26 = scalar_lea.vmem %s412_s6, 128  ;;  %p647_p7 = scmp.lt.s32.totalorder %s412_s6, %s412_s6 }
  0x3f   :  { %521 = vmatprep.mubr.msk.bf16.mxu0 %vm679_vm0, %v678_v0  ;;  %490 = vmatpush3.bf16.msra.mxu1 %v540_v8  ;;  %p643_p6 = scmp.ne.s32.totalorder %s412_s6, %s642_s26  ;;  %p648_p8 = scmp.lt.s32.totalorder %s642_s26, %s642_s26 }
  0x40   :  { %491 = vmatprep.subr.bf16.mxu1 %v678_v0  ;;  %506 = vmatpush3.bf16.msra.mxu0 %v546_v14 }
  0x41   :  { %507 = vmatprep.subr.bf16.mxu0 %v678_v0  ;;  %p649_p9 = por %p648_p8, %p647_p7 }
  0x43   :  { %492 = vmatpush3.bf16.msra.mxu1 %v541_v9  ;;  %p650_p10 = pnand %p649_p9, %p643_p6 }
  0x44   :  { %493 = vmatprep.subr.bf16.mxu1 %v678_v0  ;;  %508 = vmatpush3.bf16.msra.mxu0 %v547_v15 }
  0x45   :  { %509 = vmatprep.subr.bf16.mxu0 %v678_v0 }
  0x47   :  { %494 = vmatpush3.bf16.msra.mxu1 %v542_v10 }
  0x48   :  { %495 = vmatprep.subr.bf16.mxu1 %v678_v0  ;;  %510 = vmatpush3.bf16.msra.mxu0 %v548_v16 }
  0x49   :  { %511 = vmatprep.subr.bf16.mxu0 %v678_v0 }
  0x4b   :  { %496 = vmatpush3.bf16.msra.mxu1 %v543_v11 }
  0x4c   :  { %497 = vmatprep.subr.bf16.mxu1 %v678_v0  ;;  %512 = vmatpush3.bf16.msra.mxu0 %v549_v17 }
  0x4d   :  { %513 = vmatprep.subr.bf16.mxu0 %v678_v0 }
  0x4f   :  { %498 = vmatpush3.bf16.msra.mxu1 %v544_v12 }
  0x50   :  { %499 = vmatprep.subr.bf16.mxu1 %v678_v0  ;;  %514 = vmatpush3.bf16.msra.mxu0 %v550_v18 }
  0x51   :  { %515 = vmatprep.subr.bf16.mxu0 %v678_v0 }
  0x53   :  { %500 = vmatpush3.bf16.msra.mxu1 %v545_v13 }
  0x54   :  { %516 = vmatpush3.bf16.msra.mxu0 %v551_v29 }
  0x55   :  { %517 = vmatprep.subr.bf16.mxu0 %v678_v0 }
  0x58   :  { %518 = vmatpush3.bf16.msra.mxu0 %v552_v30 }
  0x59   :  { %519 = vmatprep.subr.bf16.mxu0 %v678_v0 }
  0x5c   :  { %520 = vmatpush3.bf16.msra.mxu0 %v553_v31 }
  0xfe   :  { %v147_v20 = vpop.f32.mrf.mxu0 }
  0xff   :  { %v148_v22 = vadd.f32 %v425_v19, %v147_v20 }
 0x100   :  { %v483_v21 = vpop.f32.mrf.mxu0 }
 0x101   :  { %v154_v26 = vmax.f32 %v148_v22, 0.0 }
 0x102   :  { %v150_v23 = vpop.f32.mrf.mxu0 }
 0x103   :  { %v151_v24 = vadd.f32 %v425_v19, %v150_v23 }
 0x104   :  { %v484_v25 = vpop.f32.mrf.mxu0 }
 0x105   :  { %v155_v27 = vmax.f32 %v151_v24, 0.0 }
 0x107   :  { %v156_v28 = vpack.c.bf16 %v155_v27, %v154_v26 }
 0x109   :  { %502 = vmatmul.mubr.bf16.vlgmr.msra.gmra.mxu1 %v156_v28 }
 0x1c9   :  { %v262_v33 = vpop.f32.mrf.mxu1 }
 0x1ca   :  { %v263_v35 = vadd.f32 %v429_v32, %v262_v33 }
 0x1cb   :  { %v503_v34 = vpop.f32.mrf.mxu1 }
 0x1cc   :  { %v269_v39 = vmax.f32 %v263_v35, 0.0 }
 0x1cd   :  { %v265_v36 = vpop.f32.mrf.mxu1 }
 0x1ce   :  { %v266_v37 = vadd.f32 %v429_v32, %v265_v36 }
 0x1cf   :  { %v504_v38 = vpop.f32.mrf.mxu1 }
 0x1d0   :  { %v270_v40 = vmax.f32 %v266_v37, 0.0 }
 0x1d2   :  { %v271_v41 = vpack.c.bf16 %v270_v40, %v269_v39 }
 0x1d4   :  { %522 = vmatmul.mubr.bf16.vlgmr.msra.gmra.mxu0 %v271_v41 }
 0x294   :  { %v377_v43 = vpop.f32.mrf.mxu0 }
 0x295   :  { %v378_v44 = vadd.f32 %v438_v42, %v377_v43 }
 0x296   :  { %v523_v45 = vpop.f32.mrf.mxu0 }
 0x297   :  { %v384_v46 = vsub.f32 0.0, %v378_v44 }
 0x298   :  { %v380_v47 = vpop.f32.mrf.mxu0 }
 0x299   :  { %v386_v48 = vmul.f32 1.442695, %v384_v46  ;;  %v381_v49 = vadd.f32 %v438_v42, %v380_v47 }
 0x29a   :  { %v524_v50 = vpop.f32.mrf.mxu0 }
 0x29b   :  { %554 = vpow2.f32 %v386_v48  ;;  %v385_v51 = vsub.f32 0.0, %v381_v49 }
 0x29d   :  { %v388_v52 = vmul.f32 1.442695, %v385_v51 }
 0x29f   :  { %556 = vpow2.f32 %v388_v52 }
 0x2a8   :  { %v555_v53 = vpop.eup %554 }
 0x2a9   :  { %v390_v54 = vadd.f32 1.0, %v555_v53 }
 0x2ab   :  { %558 = vrcp.f32 %v390_v54 }
 0x2ac   :  { %v557_v55 = vpop.eup %556 }
 0x2ad   :  { %v391_v56 = vadd.f32 1.0, %v557_v55 }
 0x2af   :  { %560 = vrcp.f32 %v391_v56 }
 0x2b8   :  { %v559_v57 = vpop.eup %558 }
 0x2bc   :  { %v561_v58 = vpop.eup %560 }
 0x2bd   :  { %v454_v59 = vpack.c.bf16 %v561_v58, %v559_v57 }
 0x2bf   :  { %455 = vst [vmem:[#allocation10] sm:$0xff] %v454_v59  }
 0x2c0   :  { %653 = shalt.err (!%p650_p10)
}
 0x2c1   :  { %417 = dma.vmem_to_hbm [thread:$0]  %s412_s6, 128, %s788_s7, [#allocation4], %s671_s27, %s671_s27, %s672_s28  }
 0x2c2   :  { %668 = dma.done.wait [#allocation4], 128  }
 0x2c3   :  { %669 = vsyncadd [#allocation4], 4294967168 }
 0x2c4   :  { %421 = vsyncpa [#allocation3], 1 }
 0x2c5   :  { %422 = vsyncpa [#allocation6], 1 }
 0x2c6   :  { %423 = vsyncpa [#allocation9], 1 }
 0x2c7   :  { %424 = vsyncpa [#allocation4], 1 }

</bundles_post_ra>
